<compile_context>
chip_gen: v7x
topology: tpu7x:2x2x1
jax: 0.10.0
libtpu: 0.0.40
codegen_flags: <defaults>
</compile_context>

<pallas_src>
import functools

import numpy as np
import jax
import jax.numpy as jnp
from jax.experimental import pallas as pl
from jax.experimental.pallas import tpu as pltpu

_T = 0.07                      # temperature
_EPS = 1e-12                   # torch.nn.functional.normalize eps
_MATMUL_DTYPE = jnp.bfloat16   # MXU operand dtype (set jnp.float32 for exact f32 matmul)


def _round_up(x, m):
    return ((x + m - 1) // m) * m


# ----------------------------------------------------------------------------
# Kernel 1: normalize rows, fold 1/T into q, compute positive-pair logits.
#   grid = (S, L // TB), blocks (1, TB, Cp)
# ----------------------------------------------------------------------------
def _prep_kernel(f1_ref, f2_ref, q_ref, k_ref, d_ref, *, inv_t):
    f1 = f1_ref[0].astype(jnp.float32)                     # (TB, Cp)
    f2 = f2_ref[0].astype(jnp.float32)                     # (TB, Cp)
    # x / max(||x||, eps)  ==  x * rsqrt(max(sum(x^2), eps^2))   (EUP rsqrt)
    inv1 = jax.lax.rsqrt(jnp.maximum(jnp.sum(f1 * f1, axis=-1, keepdims=True), _EPS * _EPS))
    inv2 = jax.lax.rsqrt(jnp.maximum(jnp.sum(f2 * f2, axis=-1, keepdims=True), _EPS * _EPS))
    n1 = f1 * inv1
    n2 = f2 * inv2
    # Diagonal logit (labels = arange(N)) as a row-wise dot in f32 -- no (N,N) temp.
    d_ref[0] = jnp.sum(n1 * n2, axis=-1, keepdims=True) * jnp.float32(inv_t)
    # Fold 1/T into the query side once (N*C work instead of N*N per tile).
    q_ref[0] = (n1 * jnp.float32(inv_t)).astype(q_ref.dtype)
    k_ref[0] = n2.astype(k_ref.dtype)


# ----------------------------------------------------------------------------
# Kernel 2: flash-style online log-sum-exp over the similarity logits.
#   grid = (S, L // TM, L // TN);  kv axis (j) last, "arbitrary".
# ----------------------------------------------------------------------------
def _lse_kernel(q_ref, k_ref, d_ref, bias_ref, loss_ref, m_sc, l_sc):
    j = pl.program_id(2)

    @pl.when(j == 0)
    def _init():
        m_sc[...] = jnp.full_like(m_sc, -jnp.inf)
        l_sc[...] = jnp.zeros_like(l_sc)

    q = q_ref[0]                                           # (TM, Cp), already * 1/T
    k = k_ref[0]                                           # (TN, Cp)
    # q @ k.T by contracting the last dim of BOTH operands -> no in-kernel transpose.
    s = jax.lax.dot_general(q, k, (((1,), (1,)), ((), ())),
                            preferred_element_type=jnp.float32)     # (TM, TN) f32
    s = s + bias_ref[...]                                  # (1, TN): 0 valid, -inf pad

    m_prev = m_sc[...]                                     # (TM, 1)
    m_new = jnp.maximum(m_prev, jnp.max(s, axis=-1, keepdims=True))
    p = jnp.exp(s - m_new)
    alpha = jnp.exp(m_prev - m_new)
    l_sc[...] = alpha * l_sc[...] + jnp.sum(p, axis=-1, keepdims=True)
    m_sc[...] = m_new

    @pl.when(j == pl.num_programs(2) - 1)
    def _finish():
        # per-row cross entropy: logsumexp(row) - logits[i, i]
        loss_ref[0] = (m_sc[...] + jnp.log(l_sc[...])) - d_ref[0]


# ----------------------------------------------------------------------------
# Wrapper: batched (S, N, C) matched features -> per-side mean InfoNCE loss (S,)
# ----------------------------------------------------------------------------
def _choose_tiles(n):
    if n >= 1024:
        # v7x-safe tiles (<= ~6 MiB scoped VMEM incl. double buffers / f32 logits tile)
        return _round_up(n, 1024), 512, 1024
    l = _round_up(max(n, 8), 128)
    return l, l, l


def _infonce_side_losses(f1_sides, f2_sides, temperature=_T):
    """f1_sides, f2_sides: (S, N, C).  Returns per-side mean InfoNCE loss, shape (S,)."""
    f1 = jnp.asarray(f1_sides, jnp.float32)
    f2 = jnp.asarray(f2_sides, jnp.float32)
    s_dim, n, c = f1.shape
    l, tm, tn = _choose_tiles(n)
    cp = _round_up(c, 128)                                  # lane-dense feature dim

    pad = ((0, 0), (0, l - n), (0, cp - c))
    f1p = jnp.pad(f1, pad)
    f2p = jnp.pad(f2, pad)
    inv_t = float(1.0 / temperature)

    # ---- kernel 1: normalize + fold 1/T + diagonal logits --------------------
    q, k, diag = pl.pallas_call(
        functools.partial(_prep_kernel, inv_t=inv_t),
        out_shape=(jax.ShapeDtypeStruct((s_dim, l, cp), _MATMUL_DTYPE),
                   jax.ShapeDtypeStruct((s_dim, l, cp), _MATMUL_DTYPE),
                   jax.ShapeDtypeStruct((s_dim, l, 1), jnp.float32)),
        grid_spec=pltpu.PrefetchScalarGridSpec(
            num_scalar_prefetch=0,
            grid=(s_dim, l // tm),
            in_specs=[pl.BlockSpec((1, tm, cp), lambda s, i: (s, i, 0)),
                      pl.BlockSpec((1, tm, cp), lambda s, i: (s, i, 0))],
            out_specs=[pl.BlockSpec((1, tm, cp), lambda s, i: (s, i, 0)),
                       pl.BlockSpec((1, tm, cp), lambda s, i: (s, i, 0)),
                       pl.BlockSpec((1, tm, 1), lambda s, i: (s, i, 0))]),
        compiler_params=pltpu.CompilerParams(
            dimension_semantics=("parallel", "parallel")),
    )(f1p, f2p)

    # Additive column mask: 0 for real keys, -inf for zero-padded keys.
    col_bias = jnp.where(jnp.arange(l) < n, 0.0, -jnp.inf).astype(jnp.float32)[None, :]

    # ---- kernel 2: tiled online log-sum-exp ----------------------------------
    row_loss = pl.pallas_call(
        _lse_kernel,
        out_shape=jax.ShapeDtypeStruct((s_dim, l, 1), jnp.float32),
        grid_spec=pltpu.PrefetchScalarGridSpec(
            num_scalar_prefetch=0,
            grid=(s_dim, l // tm, l // tn),
            in_specs=[pl.BlockSpec((1, tm, cp), lambda s, i, j: (s, i, 0)),   # q rows
                      pl.BlockSpec((1, tn, cp), lambda s, i, j: (s, j, 0)),   # kv block
                      pl.BlockSpec((1, tm, 1), lambda s, i, j: (s, i, 0)),    # diag
                      pl.BlockSpec((1, tn), lambda s, i, j: (0, j))],         # col bias
            out_specs=pl.BlockSpec((1, tm, 1), lambda s, i, j: (s, i, 0)),
            scratch_shapes=[pltpu.VMEM((tm, 1), jnp.float32),     # running max
                            pltpu.VMEM((tm, 1), jnp.float32)]),   # running sum
        compiler_params=pltpu.CompilerParams(
            dimension_semantics=("parallel", "parallel", "arbitrary"),
            vmem_limit_bytes=32 * 1024 * 1024),
    )(q, k, diag, col_bias)

    # Drop padded query rows; reduce the tiny (S, N) row-loss vector on host/XLA.
    return jnp.mean(row_loss[:, :n, 0], axis=1)


# ----------------------------------------------------------------------------
# Host-side glue: correspondence search (dynamic-shape NumPy, as in reference).
# ----------------------------------------------------------------------------
def find_match(triangle_index_1, triangle_index_2):
    # Nearest match over integer triangle ids; exact id match => distance 0.
    a1 = np.asarray(triangle_index_1)[:, 0].astype(np.int64)
    a2 = np.asarray(triangle_index_2)[:, 0].astype(np.int64)
    order = np.argsort(a1, kind="stable")
    s1 = a1[order]
    pos = np.clip(np.searchsorted(s1, a2), 0, len(s1) - 1)
    cand = order[pos]
    d = np.abs(a1[cand] - a2).astype(np.float64)
    return d, cand


def find_correspondence_bw_images(triangle_ids1, triangle_ids2, return_outside=False):
    if triangle_ids1.ndim == 2:
        triangle_ids1 = np.expand_dims(triangle_ids1, 2)
        triangle_ids2 = np.expand_dims(triangle_ids2, 2)
    x_1, y_1 = np.where(triangle_ids1[:, :, 0] > -1)
    triangle_index_1 = triangle_ids1[x_1, y_1]
    x_2, y_2 = np.where(triangle_ids2[:, :, 0] > -1)
    triangle_index_2 = triangle_ids2[x_2, y_2]
    d, indices = find_match(triangle_index_1, triangle_index_2)
    matched_indices_2 = np.where(d < 0.005)[0]
    matched_indices_1 = indices[matched_indices_2]
    matched_x_2 = x_2[matched_indices_2]
    matched_y_2 = y_2[matched_indices_2]
    matched_x_1 = x_1[matched_indices_1]
    matched_y_1 = y_1[matched_indices_1]
    if return_outside:
        outside_indices_2 = np.where(d > 0.008)[0]
        return (matched_x_1, matched_y_1, matched_x_2, matched_y_2,
                triangle_ids1[matched_x_1, matched_y_1][:, 0],
                triangle_ids2[matched_x_2, matched_y_2][:, 0],
                x_2[outside_indices_2], y_2[outside_indices_2])
    return (matched_x_1, matched_y_1, matched_x_2, matched_y_2,
            triangle_ids1[matched_x_1, matched_y_1][:, 0],
            triangle_ids2[matched_x_2, matched_y_2][:, 0])


def _matched_features(tri1, tri2, out1_hwc, out2_hwc, max_matches, seed):
    x_1, y_1, x_2, y_2, _, _ = find_correspondence_bw_images(tri1, tri2)
    if max_matches:
        # TODO(synk): reference uses global np.random.choice (non-deterministic);
        # a seeded Generator (same with-replacement semantics) is used here.
        rng = np.random.default_rng(seed)
        ridx = rng.choice(x_1.shape[0], max_matches)
        x_1, y_1, x_2, y_2 = x_1[ridx], y_1[ridx], x_2[ridx], y_2[ridx]
    return out1_hwc[x_1, y_1], out2_hwc[x_2, y_2]           # (N, C) gathers (glue)


def one_side_infonce_loss(tri1, tri2, out1, out2, T=_T, max_matches=None,
                          strategy=0, seed=0):
    del strategy  # unused in the reference as well
    m1, m2 = _matched_features(np.asarray(tri1), np.asarray(tri2), out1, out2,
                               max_matches, seed)
    return _infonce_side_losses(m1[None], m2[None], temperature=T)[0]


def loss_infonce(output, tri, T=_T, max_matches=None, strategy=0, seed=0):
    del strategy
    tri1, tri2 = np.asarray(tri[0]), np.asarray(tri[1])
    out1 = jnp.transpose(output[0], (1, 2, 0))               # CHW -> HWC
    out2 = jnp.transpose(output[1], (1, 2, 0))
    m1a, m2a = _matched_features(tri1, tri2, out1, out2, max_matches, seed)
    m1b, m2b = _matched_features(tri2, tri1, out2, out1, max_matches, seed + 1)
    if m1a.shape[0] == m1b.shape[0]:
        per_side = _infonce_side_losses(jnp.stack([m1a, m1b]), jnp.stack([m2a, m2b]),
                                        temperature=T)
        return (per_side[0] + per_side[1]) / 2.0
    l1 = _infonce_side_losses(m1a[None], m2a[None], temperature=T)[0]
    l2 = _infonce_side_losses(m1b[None], m2b[None], temperature=T)[0]
    return (l1 + l2) / 2.0


def compute_loss_batch(outputs, triangles, strategy=0, neg_samples=4000):
    del strategy  # unused in the reference as well
    b = outputs.shape[0]
    f1_sides, f2_sides = [], []
    for i in range(0, b, 2):
        tri1, tri2 = np.asarray(triangles[i]), np.asarray(triangles[i + 1])
        out1 = jnp.transpose(outputs[i], (1, 2, 0))
        out2 = jnp.transpose(outputs[i + 1], (1, 2, 0))
        m1, m2 = _matched_features(tri1, tri2, out1, out2, neg_samples, seed=i)
        f1_sides.append(m1), f2_sides.append(m2)
        m1, m2 = _matched_features(tri2, tri1, out2, out1, neg_samples, seed=i + 1)
        f1_sides.append(m1), f2_sides.append(m2)
    counts = {f.shape[0] for f in f1_sides}
    if len(counts) == 1:
        # All sides share N (max_matches path): one batched pallas_call for the batch.
        per_side = _infonce_side_losses(jnp.stack(f1_sides), jnp.stack(f2_sides))
    else:
        per_side = jnp.stack([_infonce_side_losses(a[None], c[None])[0]
                              for a, c in zip(f1_sides, f2_sides)])
    per_pair = per_side.reshape(-1, 2).mean(axis=1)          # (loss1 + loss2) / 2
    return per_pair.mean()


class Loss:
    def __init__(self, neg_samples=4000):
        self.neg_samples = neg_samples

    def __call__(self, outputs, triangles, sampling):
        # `sampling` maps to the (unused) `strategy` argument of the reference.
        return compute_loss_batch(outputs, triangles, strategy=sampling,
                                  neg_samples=self.neg_samples)


# ----------------------------------------------------------------------------
if __name__ == "__main__":
    # --- small numerical sanity check of the Pallas pipeline vs pure JAX -----
    def _ref_side_losses(f1, f2, t=_T):
        n1 = f1 * jax.lax.rsqrt(jnp.maximum(jnp.sum(f1 * f1, -1, keepdims=True), _EPS * _EPS))
        n2 = f2 * jax.lax.rsqrt(jnp.maximum(jnp.sum(f2 * f2, -1, keepdims=True), _EPS * _EPS))
        logits = jnp.einsum("snc,smc->snm", n1, n2, preferred_element_type=jnp.float32) / t
        m = jnp.max(logits, axis=-1)
        lse = m + jnp.log(jnp.sum(jnp.exp(logits - m[..., None]), axis=-1))
        diag = jnp.einsum("snc,snc->sn", n1, n2) / t
        return jnp.mean(lse - diag, axis=-1)

    fa = jax.random.normal(jax.random.PRNGKey(1), (2, 100, 32), jnp.float32)
    fb = jax.random.normal(jax.random.PRNGKey(2), (2, 100, 32), jnp.float32)
    got = np.asarray(_infonce_side_losses(fa, fb))           # exercises pad/mask path
    want = np.asarray(_ref_side_losses(fa, fb))
    np.testing.assert_allclose(got, want, rtol=5e-2, atol=5e-2)

    # --- end-to-end demo at small shapes --------------------------------------
    key = jax.random.PRNGKey(0)
    B, C, H, W = 2, 32, 16, 16
    outputs = jax.random.normal(key, (B, C, H, W), dtype=jnp.float32)

    # Synthetic triangle-id maps: unique ids per pixel, a few invalid (-1).
    ids = np.arange(H * W, dtype=np.int64).reshape(H, W)
    tri1 = ids.copy()
    tri2 = ids.copy()
    tri1[0, :4] = -1
    tri2[1, :4] = -1
    triangles = np.stack([tri1, tri2], axis=0)               # (B, H, W)

    loss_mod = Loss(neg_samples=128)                         # small N for the demo
    loss = loss_mod(outputs, triangles, 0)
    jax.block_until_ready(loss)
    assert np.isfinite(float(loss))
    print("KERNEL_OK")
</pallas_src>

<mosaic_0001>
module attributes {stable_mosaic.version = 11 : i64} {
  func.func @_prep_kernel(%arg0: i32, %arg1: i32, %arg2: memref<1x128x128xf32, #tpu.memory_space<vmem>>, %arg3: memref<1x128x128xf32, #tpu.memory_space<vmem>>, %arg4: memref<1x128x128xbf16, #tpu.memory_space<vmem>>, %arg5: memref<1x128x128xbf16, #tpu.memory_space<vmem>>, %arg6: memref<1x128x1xf32, #tpu.memory_space<vmem>>) attributes {dimension_semantics = [#tpu.dimension_semantics<parallel>, #tpu.dimension_semantics<parallel>], iteration_bounds = array<i64: 2, 1>, scalar_prefetch = 0 : i64, scratch_operands = 0 : i64, tpu.core_type = #tpu.core_type<tc>, window_params = [{transform_indices = @transform_0, window_bounds = array<i64: 1, 128, 128>}, {transform_indices = @transform_1, window_bounds = array<i64: 1, 128, 128>}, {transform_indices = @transform_2, window_bounds = array<i64: 1, 128, 128>}, {transform_indices = @transform_3, window_bounds = array<i64: 1, 128, 128>}, {transform_indices = @transform_4, window_bounds = array<i64: 1, 128, 1>}]} {
    %c0 = arith.constant 0 : index
    %c0_0 = arith.constant 0 : index
    %c0_1 = arith.constant 0 : index
    %0 = vector.load %arg2[%c0, %c0_0, %c0_1] : memref<1x128x128xf32, #tpu.memory_space<vmem>>, vector<1x128x128xf32>
    %1 = vector.shape_cast %0 : vector<1x128x128xf32> to vector<128x128xf32>
    %c0_2 = arith.constant 0 : index
    %c0_3 = arith.constant 0 : index
    %c0_4 = arith.constant 0 : index
    %2 = vector.load %arg3[%c0_2, %c0_3, %c0_4] : memref<1x128x128xf32, #tpu.memory_space<vmem>>, vector<1x128x128xf32>
    %3 = vector.shape_cast %2 : vector<1x128x128xf32> to vector<128x128xf32>
    %4 = arith.mulf %1, %1 : vector<128x128xf32>
    %cst = arith.constant dense<0.000000e+00> : vector<128xf32>
    %5 = vector.multi_reduction <add>, %4, %cst [1] : vector<128x128xf32> to vector<128xf32>
    %6 = vector.shape_cast %5 : vector<128xf32> to vector<128x1xf32>
    %cst_5 = arith.constant 1.000000e-24 : f32
    %7 = vector.broadcast %cst_5 : f32 to vector<128x1xf32>
    %8 = arith.maximumf %6, %7 : vector<128x1xf32>
    %9 = math.rsqrt %8 : vector<128x1xf32>
    %10 = arith.mulf %3, %3 : vector<128x128xf32>
    %cst_6 = arith.constant dense<0.000000e+00> : vector<128xf32>
    %11 = vector.multi_reduction <add>, %10, %cst_6 [1] : vector<128x128xf32> to vector<128xf32>
    %12 = vector.shape_cast %11 : vector<128xf32> to vector<128x1xf32>
    %cst_7 = arith.constant 1.000000e-24 : f32
    %13 = vector.broadcast %cst_7 : f32 to vector<128x1xf32>
    %14 = arith.maximumf %12, %13 : vector<128x1xf32>
    %15 = math.rsqrt %14 : vector<128x1xf32>
    %16 = vector.broadcast %9 : vector<128x1xf32> to vector<128x128xf32>
    %17 = arith.mulf %1, %16 : vector<128x128xf32>
    %18 = vector.broadcast %15 : vector<128x1xf32> to vector<128x128xf32>
    %19 = arith.mulf %3, %18 : vector<128x128xf32>
    %20 = arith.mulf %17, %19 : vector<128x128xf32>
    %cst_8 = arith.constant dense<0.000000e+00> : vector<128xf32>
    %21 = vector.multi_reduction <add>, %20, %cst_8 [1] : vector<128x128xf32> to vector<128xf32>
    %22 = vector.shape_cast %21 : vector<128xf32> to vector<128x1xf32>
    %cst_9 = arith.constant 14.2857141 : f32
    %23 = vector.broadcast %cst_9 : f32 to vector<128x1xf32>
    %24 = arith.mulf %22, %23 : vector<128x1xf32>
    %c0_10 = arith.constant 0 : index
    %c0_11 = arith.constant 0 : index
    %c0_12 = arith.constant 0 : index
    %25 = vector.load %arg6[%c0_10, %c0_11, %c0_12] : memref<1x128x1xf32, #tpu.memory_space<vmem>>, vector<1x128x1xf32>
    %26 = vector.shape_cast %25 : vector<1x128x1xf32> to vector<128x1xf32>
    %27 = vector.shape_cast %24 : vector<128x1xf32> to vector<1x128x1xf32>
    tpu.vector_store %arg6[%c0_10, %c0_11, %c0_12], %27 {strides = array<i32>} : memref<1x128x1xf32, #tpu.memory_space<vmem>>, vector<1x128x1xf32>,
    %cst_13 = arith.constant 14.2857141 : f32
    %28 = vector.broadcast %cst_13 : f32 to vector<128x128xf32>
    %29 = arith.mulf %17, %28 : vector<128x128xf32>
    %30 = arith.truncf %29 : vector<128x128xf32> to vector<128x128xbf16>
    %c0_14 = arith.constant 0 : index
    %c0_15 = arith.constant 0 : index
    %c0_16 = arith.constant 0 : index
    %31 = vector.load %arg4[%c0_14, %c0_15, %c0_16] : memref<1x128x128xbf16, #tpu.memory_space<vmem>>, vector<1x128x128xbf16>
    %32 = vector.shape_cast %31 : vector<1x128x128xbf16> to vector<128x128xbf16>
    %33 = vector.shape_cast %30 : vector<128x128xbf16> to vector<1x128x128xbf16>
    tpu.vector_store %arg4[%c0_14, %c0_15, %c0_16], %33 {strides = array<i32>} : memref<1x128x128xbf16, #tpu.memory_space<vmem>>, vector<1x128x128xbf16>,
    %34 = arith.truncf %19 : vector<128x128xf32> to vector<128x128xbf16>
    %c0_17 = arith.constant 0 : index
    %c0_18 = arith.constant 0 : index
    %c0_19 = arith.constant 0 : index
    %35 = vector.load %arg5[%c0_17, %c0_18, %c0_19] : memref<1x128x128xbf16, #tpu.memory_space<vmem>>, vector<1x128x128xbf16>
    %36 = vector.shape_cast %35 : vector<1x128x128xbf16> to vector<128x128xbf16>
    %37 = vector.shape_cast %34 : vector<128x128xbf16> to vector<1x128x128xbf16>
    tpu.vector_store %arg5[%c0_17, %c0_18, %c0_19], %37 {strides = array<i32>} : memref<1x128x128xbf16, #tpu.memory_space<vmem>>, vector<1x128x128xbf16>,
    return
  }
  func.func @transform_0(%arg0: i32, %arg1: i32) -> (i32, i32, i32) {
    %c0_i32 = arith.constant 0 : i32
    %c0_i32_0 = arith.constant 0 : i32
    return %arg0, %arg1, %c0_i32 : i32, i32, i32
  }
  func.func @transform_1(%arg0: i32, %arg1: i32) -> (i32, i32, i32) {
    %c0_i32 = arith.constant 0 : i32
    %c0_i32_0 = arith.constant 0 : i32
    return %arg0, %arg1, %c0_i32 : i32, i32, i32
  }
  func.func @transform_2(%arg0: i32, %arg1: i32) -> (i32, i32, i32) {
    %c0_i32 = arith.constant 0 : i32
    %c0_i32_0 = arith.constant 0 : i32
    return %arg0, %arg1, %c0_i32 : i32, i32, i32
  }
  func.func @transform_3(%arg0: i32, %arg1: i32) -> (i32, i32, i32) {
    %c0_i32 = arith.constant 0 : i32
    %c0_i32_0 = arith.constant 0 : i32
    return %arg0, %arg1, %c0_i32 : i32, i32, i32
  }
  func.func @transform_4(%arg0: i32, %arg1: i32) -> (i32, i32, i32) {
    %c0_i32 = arith.constant 0 : i32
    %c0_i32_0 = arith.constant 0 : i32
    return %arg0, %arg1, %c0_i32 : i32, i32, i32
  }
}

</mosaic_0001>

<bundles_post_ra>
// kernel: tpu_custom_call.1
= control target key start
LH: loop header
LB: loop body
LE: loop exit
PB: predicated region body
PF: predicated region fallthrough
CT: control target
= control target key end

     0   :  { %10 = vsyncpa [#allocation3], 0  ;;  %s2180_s0 = inlined_call_operand.hbm [shape: f32[2,128,128], index: 0, kind: input, shape index: {}]   ;;  %s2181_s1 = inlined_call_operand.hbm [shape: f32[2,128,128], index: 1, kind: input, shape index: {}]   ;;  %s2182_s2 = inlined_call_operand.hbm [shape: bf16[2,128,128], index: 2, kind: output, shape index: {0}]   ;;  %s2183_s3 = inlined_call_operand.hbm [shape: bf16[2,128,128], index: 3, kind: output, shape index: {1}]   ;;  %s2184_s4 = inlined_call_operand.vmem [shape: f32[2,128,1], index: 4, kind: output, shape index: {2}]  }
   0x1   :  { %12 = vsyncpa [#allocation3 + $0x1], 0 }
   0x2   :  { %13 = vsyncpa [#allocation6], 0 }
   0x3   :  { %15 = vsyncpa [#allocation6 + $0x1], 0 }
   0x4   :  { %16 = vsyncpa [#allocation4], 0 }
   0x5   :  { %18 = vsyncpa [#allocation4 + $0x1], 0 }
   0x6   :  { %19 = vsyncpa [#allocation9], 0 }
   0x7   :  { %21 = vsyncpa [#allocation9 + $0x1], 0  ;;  %s1577_s15 = smov 0   ;;  %s1579_s16 = smov 0  }
   0x8   :  { %s1581_s17 = smov 0   ;;  %s1583_s18 = smov 0  }
   0x9   :  { %s1585_s19 = smov 0   ;;  %s1587_s20 = smov 0  }
   0xa LB: > { %s1036_s21 = sadd.s32 4294967295, %s1542_s20   ;;  %s1037_s22 = sadd.s32 4294967294, %s1542_s20   ;;  %s1542_s20 = sphi %s1587_s20, %s27_s20   ;;  %s1538_s19 = sphi %s1585_s19, %s2204_s19   ;;  %s1534_s18 = sphi %s1583_s18, %s2203_s18   ;;  %s1530_s17 = sphi %s1581_s17, %s2202_s17   ;;  %s1526_s16 = sphi %s1579_s16, %s2201_s16   ;;  %s1522_s15 = sphi %s1577_s15, %s2200_s15  }
   0xb   : > { %s39_s23 = sadd.s32 1, %s1538_s19  ;;  %s48_s24 = sadd.s32 1, %s1530_s17 }
   0xc   : > { %p41_p0 = scmp.ge.s32.totalorder %s39_s23, 2  ;;  %p55_p1 = scmp.ne.s32.totalorder %s1530_s17, %s1526_s16 }
   0xd   : > { %p56_p2 = scmp.eq.s32.totalorder %s1542_s20, 0  ;;  %p61_p3 = scmp.ne.s32.totalorder %s1526_s16, %s1522_s15 }
   0xe   : > { %s2206_s23 = smov (%p41_p0, %s39_s23), 0  ;;  %p62_p5 = scmp.eq.s32.totalorder %s1036_s21, 0 }
   0xf   : > { %p1618_p4 = por %p56_p2, %p55_p1  ;;  %s43_s26 = ssub.s32 %s1538_s19, %s2206_s23 }
  0x10   : > { %p115_p6 = scmp.eq.s32.totalorder %s1036_s21, 1  ;;  %p46_p7 = scmp.eq.s32.totalorder %s43_s26, 0 }
  0x11   : > { %p1624_p8 = por %p62_p5, %p61_p3  ;;  %p121_p10 = scmp.eq.s32.totalorder %s1037_s22, 1 }
  0x12   : > { %p1628_p9 = por %p115_p6, %p55_p1  ;;  %p1246_p13 = scmp.lt.s32.totalorder %s1542_s20, 2 }
  0x13   : > { %s2189_s27 = scalar_select %p1624_p8, 1, 0 }
  0x14   : > { %s2190_s28 = scalar_select %p1628_p9, 1, 0 }
  0x15   : > { %s1633_s29 = scalar_select %p46_p7, %s1530_s17, %s48_s24  }
  0x16   : > { %p1635_p11 = por %p121_p10, %p61_p3  ;;  %s1642_s5 = sand.u32 1, %s1530_s17  }
  0x17   : > { %s1040_s6 = sshll.u32 %s1642_s5, 7  ;;  %s1093_s7 = sshll.u32 %s1538_s19, 11 }
  0x18   : > { %s2191_s30 = scalar_select %p1635_p11, 1, 0 }
  0x19   : > { %s1651_s10 = scalar_lea.hbm %s2180_s0, %s1093_s7  ;;  %s201_s11 = scalar_lea.vmem [#allocation2], %s1040_s6 }
  0x1a   : > { %s210_s12 = sshll.u32 %s201_s11, 4  ;;  %p1659_p0 = pnand %p1246_p13, %p1618_p4  ;;  %s1655_s12 = int_to_ptr.vmem [resolvable:$true] %s210_s12 }
  0x1b   : > { %s198_s14 = scalar_lea.sflag [#allocation3], %s1642_s5  ;;  %s1364_s21 = scalar_lea.hbm %s1651_s10, 2048 }
  0x1c   : > { %p1365_p2 = scmp.ne.s32.totalorder %s1651_s10, %s1364_s21  ;;  %p1366_p3 = pneg %p1659_p0 }
  0x1d   : > { %s1369_s25 = scalar_lea.hbm %s2180_s0, 4096  ;;  %p1370_p4 = scmp.lt.u32.totalorder %s1651_s10, %s2180_s0 }
  0x1e   : > { %p1367_p5 = pnand %p1366_p3, %p1365_p2  ;;  %p1371_p7 = scmp.lt.u32.totalorder %s1369_s25, %s1364_s21 }
  0x1f   : > { %p1373_p13 = scmp.lt.u32.totalorder %s1364_s21, %s1651_s10 }
  0x20   : > { %p1368_p6 = pneg %p1367_p5  ;;  %p1372_p10 = por %p1371_p7, %p1370_p4 }
  0x22   : > { %p1374_p12 = por %p1373_p13, %p1372_p10 }
  0x24   : > { %p1375_p1 = pnand %p1374_p12, %p1368_p6 }
  0x26   : > { %1378 = shalt.err (!%p1375_p1)
}
  0x27   : > { %s1379_s9 = scalar_lea.vmem %s1655_s12, 2048  ;;  %s1544_s11 = smov [#allocation2]  }
  0x28   : > { %p1380_p2 = scmp.ne.s32.totalorder %s1655_s12, %s1379_s9  ;;  %s1384_s22 = sshll.u32 %s1544_s11, 4  ;;  %s1385_s22 = int_to_ptr.vmem [resolvable:$false] %s1384_s22 }
  0x29   : > { %s1386_s24 = scalar_lea.vmem %s1385_s22, 4096  ;;  %p1387_p9 = scmp.lt.s32.totalorder %s1655_s12, %s1385_s22 }
  0x2a   : > { %p1382_p5 = pnand %p1380_p2, %p1366_p3  ;;  %p1388_p4 = scmp.lt.s32.totalorder %s1386_s24, %s1379_s9 }
  0x2c   : > { %p1383_p11 = pneg %p1382_p5  ;;  %p1389_p7 = por %p1388_p4, %p1387_p9 }
  0x2e   : > { %p1390_p10 = pnand %p1389_p7, %p1383_p11 }
  0x30   : > { %1393 = shalt.err (!%p1390_p10)
}
  0x31   : > { %s2186_s21 = smov 128   ;;  %s1546_s25 = smov 8  }
  0x32   : > { %1235 = dma.hbm_to_vmem [thread:$0]  (!%p1659_p0), %s1651_s10, 2048, %s1655_s12, %s198_s14, %s2186_s21, %s2186_s21, %s1546_s25  }
  0x33   : > { %p241_p9 = scmp.lt.s32.totalorder %s1542_s20, 3  ;;  %s1701_s9 = scalar_lea.hbm %s2181_s1, %s1093_s7 }
  0x34   : > { %p2193_p11 = scmp.ge.s32.totalorder %s1542_s20, 1  ;;  %s224_s22 = scalar_lea.vmem [#allocation5], %s1040_s6 }
  0x35   : > { %s233_s24 = sshll.u32 %s224_s22, 4  ;;  %s221_s10 = scalar_lea.sflag [#allocation6], %s1642_s5  ;;  %s1711_s24 = int_to_ptr.vmem [resolvable:$true] %s233_s24 }
  0x36   : > { %p1705_p12 = pnand %p2193_p11, %p241_p9  ;;  %s1394_s12 = scalar_lea.hbm %s1701_s9, 2048 }
  0x37   : > { %p1395_p1 = scmp.ne.s32.totalorder %s1701_s9, %s1394_s12  ;;  %s1399_s26 = scalar_lea.hbm %s2181_s1, 4096 }
  0x38   : > { %p1400_p2 = scmp.lt.u32.totalorder %s1701_s9, %s2181_s1  ;;  %p1401_p5 = scmp.lt.u32.totalorder %s1399_s26, %s1394_s12 }
  0x39   : > { %p1397_p6 = pnand %p1395_p1, %p1366_p3  ;;  %p1403_p7 = scmp.lt.u32.totalorder %s1394_s12, %s1701_s9 }
  0x3a   : > { %p1402_p4 = por %p1401_p5, %p1400_p2 }
  0x3b   : > { %p1398_p13 = pneg %p1397_p6 }
  0x3c   : > { %p1404_p10 = por %p1403_p7, %p1402_p4 }
  0x3e   : > { %p1405_p9 = pnand %p1404_p10, %p1398_p13 }
  0x40   : > { %1408 = shalt.err (!%p1405_p9)
}
  0x41   : > { %s1409_s6 = scalar_lea.vmem %s1711_s24, 2048  ;;  %s1547_s22 = smov [#allocation5]  }
  0x42   : > { %p1410_p11 = scmp.ne.s32.totalorder %s1711_s24, %s1409_s6  ;;  %s1414_s7 = sshll.u32 %s1547_s22, 4  ;;  %s1415_s7 = int_to_ptr.vmem [resolvable:$false] %s1414_s7 }
  0x43   : > { %s1416_s21 = scalar_lea.vmem %s1415_s7, 4096  ;;  %p1417_p8 = scmp.lt.s32.totalorder %s1711_s24, %s1415_s7 }
  0x44   : > { %p1412_p1 = pnand %p1410_p11, %p1366_p3  ;;  %p1418_p2 = scmp.lt.s32.totalorder %s1416_s21, %s1409_s6 }
  0x46   : > { %p1413_p6 = pneg %p1412_p1  ;;  %p1419_p5 = por %p1418_p2, %p1417_p8 }
  0x48   : > { %p1420_p4 = pnand %p1419_p5, %p1413_p6 }
  0x4a   : > { %1423 = shalt.err (!%p1420_p4)
}
  0x4b   : > { %s2195_s12 = smov 128   ;;  %245 = sbr.rel (%p1705_p12) target bundleno = 453 (0x1c5), region = 28 }
  0x4c   : > { %1238 = dma.hbm_to_vmem [thread:$0]  (!%p1659_p0), %s1701_s9, 2048, %s1711_s24, %s221_s10, %s2195_s12, %s2195_s12, %s1546_s25  }
  0x4d   : > { %s1745_s14 = sand.u32 (!%p1705_p12), 1, %s1526_s16   ;;  %p2196_p8 = scmp.ne.s32.totalorder (!%p1705_p12), %s2189_s27, 0 }
  0x4e   : > { %s1047_s26 = sshll.u32 (!%p1705_p12), %s1745_s14, 7  ;;  %s248_s8 = scalar_lea.sflag (!%p1705_p12), [#allocation3], %s1745_s14 }
  0x4f   : > { %s1749_s13 = scalar_lea.vmem (!%p1705_p12), [#allocation2], %s1047_s26 }
  0x52   : > { %1505 = dma.done.wait (%p2196_p8), %s248_s8, 2048  }
  0x53   : > { %1507 = vsyncadd (%p2196_p8), %s248_s8, 4294965248  ;;  %s257_s5 = scalar_lea.sflag [#allocation6], %s1745_s14  ;;  %s1756_s25 = scalar_lea.vmem [#allocation5], %s1047_s26 }
  0x54   : > { %1509 = dma.done.wait (%p2196_p8), %s257_s5, 2048  }
  0x55   : > { %1511 = vsyncadd (%p2196_p8), %s257_s5, 4294965248  ;;  %v1763_v0 = vld [vmem:[%s1749_s13 + $0x10] sm:$0xff]  ;;  %v1766_v1 = vld [vmem:[%s1749_s13] sm:$0xff]  ;;  %s1049_s27 = sshll.u32 %s1745_s14, 6  ;;  %s1128_s24 = sshll.u32 %s1534_s18, 10 }
  0x56   : > { %v1769_v2 = vld [vmem:[%s1749_s13 + $0x18] sm:$0xff]  ;;  %v352_v3 = vmul.f32 %v1763_v0, %v1763_v0  ;;  %v350_v4 = vmul.f32 %v1766_v1, %v1766_v1  ;;  %v1776_v5 = vld [vmem:[%s1749_s13 + $0x8] sm:$0xff]  ;;  %v1786_v9 = vld [vmem:[%s1749_s13 + $0x20] sm:$0xff]  ;;  %s1947_s9 = scalar_lea.vmem [#allocation7], %s1049_s27  ;;  %s2006_s11 = scalar_lea.vmem [#allocation8], %s1049_s27 }
  0x57   : > { %v353_v6 = vmul.f32 %v1769_v2, %v1769_v2  ;;  %v351_v7 = vmul.f32 %v1776_v5, %v1776_v5  ;;  %v1783_v8 = vld [vmem:[%s1749_s13 + $0x28] sm:$0xff]  ;;  %v354_v11 = vmul.f32 %v1786_v9, %v1786_v9  ;;  %v1793_v12 = vld [vmem:[%s1749_s13 + $0x38] sm:$0xff]  ;;  %v1796_v13 = vld [vmem:[%s1749_s13 + $0x30] sm:$0xff]  ;;  %s829_s10 = sshll.u32 %s1947_s9, 4  ;;  %s2050_s7 = scalar_lea.hbm %s2182_s2, %s1128_s24  ;;  %s2052_s10 = int_to_ptr.vmem [resolvable:$true] %s829_s10 }
  0x58   : > { %370 = vadd.xlane.f32.xlu1 %v352_v3  ;;  %366 = vadd.xlane.f32.xlu0 %v350_v4  ;;  %v355_v10 = vmul.f32 %v1783_v8, %v1783_v8  ;;  %v357_v14 = vmul.f32 %v1793_v12, %v1793_v12  ;;  %v356_v15 = vmul.f32 %v1796_v13, %v1796_v13  ;;  %v1803_v16 = vld [vmem:[%s1749_s13 + $0x48] sm:$0xff]  ;;  %v1806_v17 = vld [vmem:[%s1749_s13 + $0x40] sm:$0xff]  ;;  %v1813_v20 = vld [vmem:[%s1749_s13 + $0x58] sm:$0xff]  ;;  %s800_s21 = scalar_lea.sflag [#allocation4], %s1745_s14  ;;  %s1424_s12 = scalar_lea.vmem %s2052_s10, 1024 }
  0x59   : > { %v359_v18 = vmul.f32 %v1803_v16, %v1803_v16  ;;  %v358_v19 = vmul.f32 %v1806_v17, %v1806_v17  ;;  %v1816_v21 = vld [vmem:[%s1749_s13 + $0x50] sm:$0xff]  ;;  %v361_v22 = vmul.f32 %v1813_v20, %v1813_v20  ;;  %v1823_v24 = vld [vmem:[%s1749_s13 + $0x68] sm:$0xff]  ;;  %v1826_v25 = vld [vmem:[%s1749_s13 + $0x60] sm:$0xff]  ;;  %p1425_p0 = scmp.ne.s32.totalorder %s2052_s10, %s1424_s12  ;;  %p2197_p3 = scmp.ne.s32.totalorder %s2190_s28, 0 }
  0x5a   : > { %v360_v23 = vmul.f32 %v1816_v21, %v1816_v21  ;;  %v363_v26 = vmul.f32 %v1823_v24, %v1823_v24  ;;  %v362_v27 = vmul.f32 %v1826_v25, %v1826_v25  ;;  %v1833_v28 = vld [vmem:[%s1749_s13 + $0x78] sm:$0xff]  ;;  %v1836_v29 = vld [vmem:[%s1749_s13 + $0x70] sm:$0xff]  ;;  %v1843_v32 = vld [vmem:[%s1756_s25 + $0x8] sm:$0xff]  ;;  %s1548_s26 = smov [#allocation7]  }
  0x5b   : > { %v365_v30 = vmul.f32 %v1833_v28, %v1833_v28  ;;  %v364_v31 = vmul.f32 %v1836_v29, %v1836_v29  ;;  %v1846_v33 = vld [vmem:[%s1756_s25] sm:$0xff]  ;;  %v431_v34 = vmul.f32 %v1843_v32, %v1843_v32  ;;  %v1853_v36 = vld [vmem:[%s1756_s25 + $0x18] sm:$0xff]  ;;  %v1856_v37 = vld [vmem:[%s1756_s25 + $0x10] sm:$0xff]  ;;  %p1426_p12 = pnand %p1425_p0, %p2197_p3  ;;  %s1428_s8 = sshll.u32 %s1548_s26, 4  ;;  %s1429_s8 = int_to_ptr.vmem [resolvable:$false] %s1428_s8 }
  0x5c   : > { %372 = vadd.xlane.f32.xlu1 %v353_v6  ;;  %368 = vadd.xlane.f32.xlu0 %v351_v7  ;;  %v430_v35 = vmul.f32 %v1846_v33, %v1846_v33  ;;  %v433_v38 = vmul.f32 %v1853_v36, %v1853_v36  ;;  %v432_v39 = vmul.f32 %v1856_v37, %v1856_v37  ;;  %v1863_v40 = vld [vmem:[%s1756_s25 + $0x28] sm:$0xff]  ;;  %v1866_v41 = vld [vmem:[%s1756_s25 + $0x20] sm:$0xff]  ;;  %v1873_v44 = vld [vmem:[%s1756_s25 + $0x38] sm:$0xff]  ;;  %s1430_s13 = scalar_lea.vmem %s1429_s8, 2048  ;;  %p1431_p7 = scmp.lt.s32.totalorder %s2052_s10, %s1429_s8 }
  0x5d   : > { %v435_v42 = vmul.f32 %v1863_v40, %v1863_v40  ;;  %v434_v43 = vmul.f32 %v1866_v41, %v1866_v41  ;;  %v1876_v45 = vld [vmem:[%s1756_s25 + $0x30] sm:$0xff]  ;;  %v437_v46 = vmul.f32 %v1873_v44, %v1873_v44  ;;  %v1883_v48 = vld [vmem:[%s1756_s25 + $0x48] sm:$0xff]  ;;  %v1886_v49 = vld [vmem:[%s1756_s25 + $0x40] sm:$0xff]  ;;  %p1427_p13 = pneg %p1426_p12  ;;  %p1432_p10 = scmp.lt.s32.totalorder %s1430_s13, %s1424_s12 }
  0x5e   : > { %v436_v47 = vmul.f32 %v1876_v45, %v1876_v45  ;;  %v439_v50 = vmul.f32 %v1883_v48, %v1883_v48  ;;  %v438_v51 = vmul.f32 %v1886_v49, %v1886_v49  ;;  %v1893_v52 = vld [vmem:[%s1756_s25 + $0x58] sm:$0xff]  ;;  %v1896_v53 = vld [vmem:[%s1756_s25 + $0x50] sm:$0xff]  ;;  %v1903_v56 = vld [vmem:[%s1756_s25 + $0x68] sm:$0xff] }
  0x5f   : > { %v441_v54 = vmul.f32 %v1893_v52, %v1893_v52  ;;  %v440_v55 = vmul.f32 %v1896_v53, %v1896_v53  ;;  %v1906_v57 = vld [vmem:[%s1756_s25 + $0x60] sm:$0xff]  ;;  %v443_v58 = vmul.f32 %v1903_v56, %v1903_v56  ;;  %v1913_v60 = vld [vmem:[%s1756_s25 + $0x78] sm:$0xff]  ;;  %v1916_v61 = vld [vmem:[%s1756_s25 + $0x70] sm:$0xff]  ;;  %p1433_p9 = por %p1432_p10, %p1431_p7 }
  0x60   : > { %376 = vadd.xlane.f32.xlu1 %v355_v10  ;;  %374 = vadd.xlane.f32.xlu0 %v354_v11  ;;  %v442_v59 = vmul.f32 %v1906_v57, %v1906_v57  ;;  %v445_v62 = vmul.f32 %v1913_v60, %v1913_v60  ;;  %v444_v63 = vmul.f32 %v1916_v61, %v1916_v61 }
  0x61   : > { %p1434_p11 = pnand %p1433_p9, %p1427_p13 }
  0x64   : > { %380 = vadd.xlane.f32.xlu1 %v357_v14  ;;  %378 = vadd.xlane.f32.xlu0 %v356_v15 }
  0x68   : > { %384 = vadd.xlane.f32.xlu1 %v359_v18  ;;  %382 = vadd.xlane.f32.xlu0 %v358_v19 }
  0x6c   : > { %388 = vadd.xlane.f32.xlu1 %v361_v22  ;;  %386 = vadd.xlane.f32.xlu0 %v360_v23 }
  0x70   : > { %392 = vadd.xlane.f32.xlu1 %v363_v26  ;;  %390 = vadd.xlane.f32.xlu0 %v362_v27 }
  0x74   : > { %396 = vadd.xlane.f32.xlu1 %v365_v30  ;;  %394 = vadd.xlane.f32.xlu0 %v364_v31 }
  0x78   : > { %448 = vadd.xlane.f32.xlu1 %v431_v34  ;;  %446 = vadd.xlane.f32.xlu0 %v430_v35 }
  0x7c   : > { %452 = vadd.xlane.f32.xlu1 %v433_v38  ;;  %450 = vadd.xlane.f32.xlu0 %v432_v39 }
  0x80   : > { %456 = vadd.xlane.f32.xlu1 %v435_v42  ;;  %454 = vadd.xlane.f32.xlu0 %v434_v43 }
  0x84   : > { %460 = vadd.xlane.f32.xlu1 %v437_v46  ;;  %458 = vadd.xlane.f32.xlu0 %v436_v47 }
  0x88   : > { %464 = vadd.xlane.f32.xlu1 %v439_v50  ;;  %462 = vadd.xlane.f32.xlu0 %v438_v51 }
  0x8c   : > { %468 = vadd.xlane.f32.xlu1 %v441_v54  ;;  %466 = vadd.xlane.f32.xlu0 %v440_v55 }
  0x90   : > { %472 = vadd.xlane.f32.xlu1 %v443_v58  ;;  %470 = vadd.xlane.f32.xlu0 %v442_v59 }
  0x94   : > { %476 = vadd.xlane.f32.xlu1 %v445_v62  ;;  %474 = vadd.xlane.f32.xlu0 %v444_v63 }
  0xe5   : > { %v371_v3 = vpop.xlane.xlu1 %370  ;;  %v367_v4 = vpop.xlane.xlu0 %366 }
  0xe6   : > { %v400_v6 = vmax.f32 %v371_v3, 1e-24  ;;  %v398_v7 = vmax.f32 %v367_v4, 1e-24 }
  0xe8   : > { %1300 = vrsqrt.f32 %v400_v6 }
  0xe9   : > { %1302 = vrsqrt.f32 %v398_v7  ;;  %v373_v10 = vpop.xlane.xlu1 %372  ;;  %v369_v11 = vpop.xlane.xlu0 %368 }
  0xea   : > { %v401_v14 = vmax.f32 %v373_v10, 1e-24  ;;  %v399_v15 = vmax.f32 %v369_v11, 1e-24 }
  0xec   : > { %1304 = vrsqrt.f32 %v401_v14 }
  0xed   : > { %1306 = vrsqrt.f32 %v399_v15  ;;  %v377_v18 = vpop.xlane.xlu1 %376  ;;  %v375_v19 = vpop.xlane.xlu0 %374 }
  0xee   : > { %v403_v22 = vmax.f32 %v377_v18, 1e-24  ;;  %v402_v23 = vmax.f32 %v375_v19, 1e-24 }
  0xf0   : > { %1308 = vrsqrt.f32 %v403_v22 }
  0xf1   : > { %1310 = vrsqrt.f32 %v402_v23  ;;  %v381_v26 = vpop.xlane.xlu1 %380  ;;  %v379_v27 = vpop.xlane.xlu0 %378 }
  0xf2   : > { %v1301_v30 = vpop.eup %1300  ;;  %v405_v31 = vmax.f32 %v381_v26, 1e-24  ;;  %v404_v34 = vmax.f32 %v379_v27, 1e-24 }
  0xf3   : > { %v1303_v35 = vpop.eup %1302  ;;  %v1927_v43 = vmul.f32 %v1301_v30, %v1763_v0 }
  0xf4   : > { %1312 = vrsqrt.f32 %v405_v31  ;;  %v1924_v42 = vmul.f32 %v1303_v35, %v1766_v1 }
  0xf5   : > { %1314 = vrsqrt.f32 %v404_v34  ;;  %v385_v38 = vpop.xlane.xlu1 %384  ;;  %v383_v39 = vpop.xlane.xlu0 %382  ;;  %v625_v62 = vmul.f32 14.285714, %v1927_v43 }
  0xf6   : > { %v1305_v46 = vpop.eup %1304  ;;  %v407_v47 = vmax.f32 %v385_v38, 1e-24  ;;  %v406_v50 = vmax.f32 %v383_v39, 1e-24  ;;  %v623_v1 = vmul.f32 14.285714, %v1924_v42 }
  0xf7   : > { %v1307_v51 = vpop.eup %1306  ;;  %v1930_v54 = vmul.f32 %v1305_v46, %v1769_v2 }
  0xf8   : > { %1316 = vrsqrt.f32 %v407_v47  ;;  %v1933_v55 = vmul.f32 %v1307_v51, %v1776_v5 }
  0xf9   : > { %1318 = vrsqrt.f32 %v406_v50  ;;  %v389_v58 = vpop.xlane.xlu1 %388  ;;  %v387_v59 = vpop.xlane.xlu0 %386  ;;  %v626_v0 = vmul.f32 14.285714, %v1930_v54 }
  0xfa   : > { %v1309_v63 = vpop.eup %1308  ;;  %v409_v3 = vmax.f32 %v389_v58, 1e-24  ;;  %v408_v4 = vmax.f32 %v387_v59, 1e-24  ;;  %v624_v2 = vmul.f32 14.285714, %v1933_v55 }
  0xfb   : > { %v1311_v6 = vpop.eup %1310  ;;  %v1138_v7 = vpack.c.bf16 %v626_v0, %v625_v62  ;;  %v1940_v5 = vmul.f32 %v1309_v63, %v1783_v8 }
  0xfc   : > { %1320 = vrsqrt.f32 %v409_v3  ;;  %v1133_v10 = vpack.c.bf16 %v624_v2, %v623_v1  ;;  %v1943_v11 = vmul.f32 %v1311_v6, %v1786_v9 }
  0xfd   : > { %1322 = vrsqrt.f32 %v408_v4  ;;  %v393_v14 = vpop.xlane.xlu1 %392  ;;  %v391_v15 = vpop.xlane.xlu0 %390  ;;  %1210 = vst [vmem:[%s1947_s9 + $0x8] sm:$0xff] %v1138_v7   ;;  %v628_v18 = vmul.f32 14.285714, %v1940_v5 }
  0xfe   : > { %v1313_v19 = vpop.eup %1312  ;;  %v411_v22 = vmax.f32 %v393_v14, 1e-24  ;;  %v410_v8 = vmax.f32 %v391_v15, 1e-24  ;;  %1134 = vst [vmem:[%s1947_s9] sm:$0xff] %v1133_v10   ;;  %v627_v23 = vmul.f32 14.285714, %v1943_v11 }
  0xff   : > { %v1315_v9 = vpop.eup %1314  ;;  %v1954_v26 = vmul.f32 %v1313_v19, %v1793_v12 }
 0x100   : > { %1324 = vrsqrt.f32 %v411_v22  ;;  %v1143_v27 = vpack.c.bf16 %v628_v18, %v627_v23  ;;  %v1957_v30 = vmul.f32 %v1315_v9, %v1796_v13 }
 0x101   : > { %1326 = vrsqrt.f32 %v410_v8  ;;  %v397_v31 = vpop.xlane.xlu1 %396  ;;  %v395_v34 = vpop.xlane.xlu0 %394  ;;  %v630_v35 = vmul.f32 14.285714, %v1954_v26 }
 0x102   : > { %v1317_v38 = vpop.eup %1316  ;;  %v413_v39 = vmax.f32 %v397_v31, 1e-24  ;;  %v412_v46 = vmax.f32 %v395_v34, 1e-24  ;;  %1211 = vst [vmem:[%s1947_s9 + $0x10] sm:$0xff] %v1143_v27  }
 0x103   : > { %v629_v47 = vmul.f32 14.285714, %v1957_v30  ;;  %v1319_v50 = vpop.eup %1318  ;;  %v1963_v12 = vmul.f32 %v1317_v38, %v1803_v16 }
 0x104   : > { %1328 = vrsqrt.f32 %v413_v39  ;;  %v1966_v13 = vmul.f32 %v1319_v50, %v1806_v17 }
 0x105   : > { %v1148_v51 = vpack.c.bf16 %v630_v35, %v629_v47  ;;  %1330 = vrsqrt.f32 %v412_v46  ;;  %v449_v58 = vpop.xlane.xlu1 %448  ;;  %v447_v59 = vpop.xlane.xlu0 %446  ;;  %v632_v1 = vmul.f32 14.285714, %v1963_v12 }
 0x106   : > { %v1321_v0 = vpop.eup %1320  ;;  %v479_v62 = vmax.f32 %v449_v58, 1e-24  ;;  %v478_v63 = vmax.f32 %v447_v59, 1e-24  ;;  %v631_v3 = vmul.f32 14.285714, %v1966_v13 }
 0x107   : > { %1212 = vst [vmem:[%s1947_s9 + $0x18] sm:$0xff] %v1148_v51   ;;  %v1323_v4 = vpop.eup %1322  ;;  %v1972_v16 = vmul.f32 %v1321_v0, %v1813_v20 }
 0x108   : > { %1332 = vrsqrt.f32 %v479_v62  ;;  %v1153_v2 = vpack.c.bf16 %v632_v1, %v631_v3  ;;  %v1975_v17 = vmul.f32 %v1323_v4, %v1816_v21 }
 0x109   : > { %1334 = vrsqrt.f32 %v478_v63  ;;  %v453_v6 = vpop.xlane.xlu1 %452  ;;  %v451_v7 = vpop.xlane.xlu0 %450  ;;  %v634_v10 = vmul.f32 14.285714, %v1972_v16 }
 0x10a   : > { %v1325_v14 = vpop.eup %1324  ;;  %v481_v15 = vmax.f32 %v453_v6, 1e-24  ;;  %v480_v18 = vmax.f32 %v451_v7, 1e-24  ;;  %1213 = vst [vmem:[%s1947_s9 + $0x20] sm:$0xff] %v1153_v2  }
 0x10b   : > { %v633_v19 = vmul.f32 14.285714, %v1975_v17  ;;  %v1327_v22 = vpop.eup %1326  ;;  %v1981_v20 = vmul.f32 %v1325_v14, %v1823_v24 }
 0x10c   : > { %1336 = vrsqrt.f32 %v481_v15  ;;  %v1984_v21 = vmul.f32 %v1327_v22, %v1826_v25 }
 0x10d   : > { %v1158_v8 = vpack.c.bf16 %v634_v10, %v633_v19  ;;  %1338 = vrsqrt.f32 %v480_v18  ;;  %v457_v23 = vpop.xlane.xlu1 %456  ;;  %v455_v9 = vpop.xlane.xlu0 %454  ;;  %v636_v27 = vmul.f32 14.285714, %v1981_v20 }
 0x10e   : > { %v1329_v31 = vpop.eup %1328  ;;  %v483_v34 = vmax.f32 %v457_v23, 1e-24  ;;  %v482_v35 = vmax.f32 %v455_v9, 1e-24  ;;  %v635_v38 = vmul.f32 14.285714, %v1984_v21 }
 0x10f   : > { %1214 = vst [vmem:[%s1947_s9 + $0x28] sm:$0xff] %v1158_v8   ;;  %v1331_v39 = vpop.eup %1330  ;;  %v1990_v24 = vmul.f32 %v1329_v31, %v1833_v28 }
 0x110   : > { %1340 = vrsqrt.f32 %v483_v34  ;;  %v1163_v46 = vpack.c.bf16 %v636_v27, %v635_v38  ;;  %v1993_v25 = vmul.f32 %v1331_v39, %v1836_v29 }
 0x111   : > { %1342 = vrsqrt.f32 %v482_v35  ;;  %v461_v47 = vpop.xlane.xlu1 %460  ;;  %v459_v50 = vpop.xlane.xlu0 %458  ;;  %v638_v51 = vmul.f32 14.285714, %v1990_v24 }
 0x112   : > { %v1333_v58 = vpop.eup %1332  ;;  %v485_v59 = vmax.f32 %v461_v47, 1e-24  ;;  %v484_v1 = vmax.f32 %v459_v50, 1e-24  ;;  %1215 = vst [vmem:[%s1947_s9 + $0x30] sm:$0xff] %v1163_v46  }
 0x113   : > { %v637_v0 = vmul.f32 14.285714, %v1993_v25  ;;  %v1335_v62 = vpop.eup %1334  ;;  %v527_v28 = vmul.f32 %v1333_v58, %v1843_v32 }
 0x114   : > { %1344 = vrsqrt.f32 %v485_v59  ;;  %v526_v63 = vmul.f32 %v1335_v62, %v1846_v33 }
 0x115   : > { %v1168_v29 = vpack.c.bf16 %v638_v51, %v637_v0  ;;  %1346 = vrsqrt.f32 %v484_v1  ;;  %v465_v3 = vpop.xlane.xlu1 %464  ;;  %v463_v4 = vpop.xlane.xlu0 %462  ;;  %v543_v2 = vmul.f32 %v527_v28, %v1933_v55 }
 0x116   : > { %v1337_v6 = vpop.eup %1336  ;;  %v487_v7 = vmax.f32 %v465_v3, 1e-24  ;;  %v486_v10 = vmax.f32 %v463_v4, 1e-24  ;;  %v542_v14 = vmul.f32 %v526_v63, %v1924_v42  ;;  %v1173_v15 = vpack.c.bf16 %v527_v28, %v526_v63 }
 0x117   : > { %1216 = vst [vmem:[%s1947_s9 + $0x38] sm:$0xff] %v1168_v29   ;;  %v1339_v18 = vpop.eup %1338  ;;  %560 = vadd.xlane.f32.xlu1 %v543_v2  ;;  %v529_v32 = vmul.f32 %v1337_v6, %v1853_v36 }
 0x118   : > { %1348 = vrsqrt.f32 %v487_v7  ;;  %1174 = vst [vmem:[%s2006_s11] sm:$0xff] %v1173_v15   ;;  %558 = vadd.xlane.f32.xlu0 %v542_v14  ;;  %v528_v33 = vmul.f32 %v1339_v18, %v1856_v37 }
 0x119   : > { %1350 = vrsqrt.f32 %v486_v10  ;;  %v469_v55 = vpop.xlane.xlu1 %468  ;;  %v467_v19 = vpop.xlane.xlu0 %466  ;;  %v545_v42 = vmul.f32 %v529_v32, %v1930_v54 }
 0x11a   : > { %v1341_v22 = vpop.eup %1340  ;;  %v489_v8 = vmax.f32 %v469_v55, 1e-24  ;;  %v488_v23 = vmax.f32 %v467_v19, 1e-24  ;;  %v544_v36 = vmul.f32 %v528_v33, %v1927_v43  ;;  %v1178_v9 = vpack.c.bf16 %v529_v32, %v528_v33 }
 0x11b   : > { %v1343_v27 = vpop.eup %1342  ;;  %564 = vadd.xlane.f32.xlu1 %v545_v42  ;;  %v531_v31 = vmul.f32 %v1341_v22, %v1863_v40 }
 0x11c   : > { %1352 = vrsqrt.f32 %v489_v8  ;;  %1217 = vst [vmem:[%s2006_s11 + $0x8] sm:$0xff] %v1178_v9   ;;  %562 = vadd.xlane.f32.xlu0 %v544_v36  ;;  %v530_v37 = vmul.f32 %v1343_v27, %v1866_v41 }
 0x11d   : > { %1354 = vrsqrt.f32 %v488_v23  ;;  %v473_v34 = vpop.xlane.xlu1 %472  ;;  %v471_v35 = vpop.xlane.xlu0 %470  ;;  %v547_v54 = vmul.f32 %v531_v31, %v1940_v5 }
 0x11e   : > { %v1345_v38 = vpop.eup %1344  ;;  %v491_v39 = vmax.f32 %v473_v34, 1e-24  ;;  %v490_v46 = vmax.f32 %v471_v35, 1e-24  ;;  %v546_v43 = vmul.f32 %v530_v37, %v1943_v11  ;;  %v1183_v47 = vpack.c.bf16 %v531_v31, %v530_v37 }
 0x11f   : > { %v1347_v50 = vpop.eup %1346  ;;  %568 = vadd.xlane.f32.xlu1 %v547_v54  ;;  %v533_v40 = vmul.f32 %v1345_v38, %v1873_v44 }
 0x120   : > { %1356 = vrsqrt.f32 %v491_v39  ;;  %1218 = vst [vmem:[%s2006_s11 + $0x10] sm:$0xff] %v1183_v47   ;;  %566 = vadd.xlane.f32.xlu0 %v546_v43  ;;  %v532_v41 = vmul.f32 %v1347_v50, %v1876_v45 }
 0x121   : > { %1358 = vrsqrt.f32 %v490_v46  ;;  %v477_v51 = vpop.xlane.xlu1 %476  ;;  %v475_v58 = vpop.xlane.xlu0 %474  ;;  %v549_v5 = vmul.f32 %v533_v40, %v1954_v26 }
 0x122   : > { %v1349_v59 = vpop.eup %1348  ;;  %v493_v1 = vmax.f32 %v477_v51, 1e-24  ;;  %v492_v0 = vmax.f32 %v475_v58, 1e-24  ;;  %v548_v11 = vmul.f32 %v532_v41, %v1957_v30  ;;  %v1188_v62 = vpack.c.bf16 %v533_v40, %v532_v41 }
 0x123   : > { %v1351_v28 = vpop.eup %1350  ;;  %572 = vadd.xlane.f32.xlu1 %v549_v5  ;;  %v535_v44 = vmul.f32 %v1349_v59, %v1883_v48 }
 0x124   : > { %1360 = vrsqrt.f32 %v493_v1  ;;  %1219 = vst [vmem:[%s2006_s11 + $0x18] sm:$0xff] %v1188_v62   ;;  %570 = vadd.xlane.f32.xlu0 %v548_v11  ;;  %v534_v45 = vmul.f32 %v1351_v28, %v1886_v49 }
 0x125   : > { %1362 = vrsqrt.f32 %v492_v0  ;;  %v551_v63 = vmul.f32 %v535_v44, %v1963_v12 }
 0x126   : > { %v1353_v26 = vpop.eup %1352  ;;  %v550_v29 = vmul.f32 %v534_v45, %v1966_v13  ;;  %v1193_v3 = vpack.c.bf16 %v535_v44, %v534_v45 }
 0x127   : > { %v1355_v30 = vpop.eup %1354  ;;  %576 = vadd.xlane.f32.xlu1 %v551_v63  ;;  %v537_v4 = vmul.f32 %v1353_v26, %v1893_v52 }
 0x128   : > { %1220 = vst [vmem:[%s2006_s11 + $0x20] sm:$0xff] %v1193_v3   ;;  %574 = vadd.xlane.f32.xlu0 %v550_v29  ;;  %v536_v48 = vmul.f32 %v1355_v30, %v1896_v53 }
 0x129   : > { %v553_v2 = vmul.f32 %v537_v4, %v1972_v16 }
 0x12a   : > { %v1357_v6 = vpop.eup %1356  ;;  %v552_v49 = vmul.f32 %v536_v48, %v1975_v17  ;;  %v1198_v12 = vpack.c.bf16 %v537_v4, %v536_v48 }
 0x12b   : > { %v1359_v7 = vpop.eup %1358  ;;  %580 = vadd.xlane.f32.xlu1 %v553_v2  ;;  %v539_v13 = vmul.f32 %v1357_v6, %v1903_v56 }
 0x12c   : > { %1221 = vst [vmem:[%s2006_s11 + $0x28] sm:$0xff] %v1198_v12   ;;  %578 = vadd.xlane.f32.xlu0 %v552_v49  ;;  %v538_v52 = vmul.f32 %v1359_v7, %v1906_v57 }
 0x12d   : > { %v555_v10 = vmul.f32 %v539_v13, %v1981_v20 }
 0x12e   : > { %v1361_v53 = vpop.eup %1360  ;;  %v554_v16 = vmul.f32 %v538_v52, %v1984_v21  ;;  %v1203_v14 = vpack.c.bf16 %v539_v13, %v538_v52 }
 0x12f   : > { %v1363_v17 = vpop.eup %1362  ;;  %584 = vadd.xlane.f32.xlu1 %v555_v10  ;;  %v541_v15 = vmul.f32 %v1361_v53, %v1913_v60 }
 0x130   : > { %1222 = vst [vmem:[%s2006_s11 + $0x30] sm:$0xff] %v1203_v14   ;;  %582 = vadd.xlane.f32.xlu0 %v554_v16  ;;  %v540_v56 = vmul.f32 %v1363_v17, %v1916_v61 }
 0x131   : > { %v557_v57 = vmul.f32 %v541_v15, %v1990_v24 }
 0x132   : > { %v556_v20 = vmul.f32 %v540_v56, %v1993_v25  ;;  %v1208_v18 = vpack.c.bf16 %v541_v15, %v540_v56 }
 0x133   : > { %588 = vadd.xlane.f32.xlu1 %v557_v57 }
 0x134   : > { %1223 = vst [vmem:[%s2006_s11 + $0x38] sm:$0xff] %v1208_v18   ;;  %586 = vadd.xlane.f32.xlu0 %v556_v20 }
 0x135   : > { %1437 = shalt.err (!%p1434_p11)
}
 0x136   : > { %s1438_s5 = scalar_lea.hbm %s2050_s7, 1024  ;;  %s1442_s9 = scalar_lea.hbm %s2182_s2, 2048 }
 0x137   : > { %p1439_p1 = scmp.ne.s32.totalorder %s2050_s7, %s1438_s5  ;;  %p1443_p5 = scmp.lt.u32.totalorder %s2050_s7, %s2182_s2 }
 0x138   : > { %p1444_p4 = scmp.lt.u32.totalorder %s1442_s9, %s1438_s5  ;;  %p1446_p0 = scmp.lt.u32.totalorder %s1438_s5, %s2050_s7 }
 0x139   : > { %p1440_p6 = pnand %p1439_p1, %p2197_p3 }
 0x13a   : > { %p1445_p8 = por %p1444_p4, %p1443_p5 }
 0x13b   : > { %p1441_p2 = pneg %p1440_p6 }
 0x13c   : > { %p1447_p12 = por %p1446_p0, %p1445_p8 }
 0x13e   : > { %p1448_p13 = pnand %p1447_p12, %p1441_p2 }
 0x140   : > { %1451 = shalt.err (!%p1448_p13)
}
 0x141   : > { %s1549_s12 = smov 64   ;;  %s1550_s26 = smov 4  }
 0x142   : > { %1228 = dma.vmem_to_hbm [thread:$0]  (%p2197_p3), %s2052_s10, 1024, %s2050_s7, %s800_s21, %s1549_s12, %s1549_s12, %s1550_s26  }
 0x143   : > { %s2086_s5 = scalar_lea.hbm %s2183_s3, %s1128_s24  ;;  %s847_s25 = sshll.u32 %s2006_s11, 4  ;;  %s2089_s25 = int_to_ptr.vmem [resolvable:$true] %s847_s25 }
 0x144   : > { %s805_s27 = scalar_lea.sflag [#allocation9], %s1745_s14  ;;  %s1452_s9 = scalar_lea.vmem %s2089_s25, 1024 }
 0x145   : > { %p1453_p7 = scmp.ne.s32.totalorder %s2089_s25, %s1452_s9  ;;  %s1551_s6 = smov [#allocation8]  }
 0x146   : > { %s1456_s10 = sshll.u32 %s1551_s6, 4  ;;  %s1457_s10 = int_to_ptr.vmem [resolvable:$false] %s1456_s10 }
 0x147   : > { %p1454_p10 = pnand %p1453_p7, %p2197_p3  ;;  %s1458_s7 = scalar_lea.vmem %s1457_s10, 2048 }
 0x148   : > { %p1459_p11 = scmp.lt.s32.totalorder %s2089_s25, %s1457_s10  ;;  %p1460_p1 = scmp.lt.s32.totalorder %s1458_s7, %s1452_s9 }
 0x149   : > { %p1455_p9 = pneg %p1454_p10 }
 0x14a   : > { %p1461_p6 = por %p1460_p1, %p1459_p11 }
 0x14c   : > { %p1462_p2 = pnand %p1461_p6, %p1455_p9 }
 0x14e   : > { %1465 = shalt.err (!%p1462_p2)
}
 0x14f   : > { %s1466_s11 = scalar_lea.hbm %s2086_s5, 1024  ;;  %s1470_s22 = scalar_lea.hbm %s2183_s3, 2048 }
 0x150   : > { %p1467_p5 = scmp.ne.s32.totalorder %s2086_s5, %s1466_s11  ;;  %p1471_p0 = scmp.lt.u32.totalorder %s2086_s5, %s2183_s3 }
 0x151   : > { %p1472_p12 = scmp.lt.u32.totalorder %s1470_s22, %s1466_s11  ;;  %p1474_p7 = scmp.lt.u32.totalorder %s1466_s11, %s2086_s5 }
 0x152   : > { %p1468_p4 = pnand %p1467_p5, %p2197_p3 }
 0x153   : > { %p1473_p13 = por %p1472_p12, %p1471_p0 }
 0x154   : > { %p1469_p8 = pneg %p1468_p4 }
 0x155   : > { %p1475_p10 = por %p1474_p7, %p1473_p13 }
 0x157   : > { %p1476_p9 = pnand %p1475_p10, %p1469_p8 }
 0x159   : > { %1479 = shalt.err (!%p1476_p9)
}
 0x15a   : > { %1229 = dma.vmem_to_hbm [thread:$0]  (%p2197_p3), %s2089_s25, 1024, %s2086_s5, %s805_s27, %s1549_s12, %s1549_s12, %s1550_s26   ;;  %vm606_vm0 = vcmask 7168  }
 0x15b   : > { %p309_p11 = scmp.lt.s32.totalorder %s1534_s18, 1 }
 0x15d   : > { %s2208_s18 = smov (!%p309_p11, %s1534_s18), 1 }
 0x15e   : > { %s1095_s9 = sshll.u32 %s2208_s18, 7 }
 0x15f   : > { %s2123_s7 = scalar_lea.vmem %s2184_s4, %s1095_s9 }
 0x1a4   : > { %v561_v60 = vpop.xlane.xlu1 %560 }
 0x1a5   : > { %v591_v61 = vmul.f32 14.285714, %v561_v60  ;;  %v559_v21 = vpop.xlane.xlu0 %558 }
 0x1a6   : > { %v590_v24 = vmul.f32 14.285714, %v559_v21 }
 0x1a7   : > { %608 = vst.msk [vmem:[%s2123_s7 + $0x8] sm:$0xff] %vm606_vm0, %v591_v61 }
 0x1a8   : > { %607 = vst.msk [vmem:[%s2123_s7] sm:$0xff] %vm606_vm0, %v590_v24  ;;  %v565_v25 = vpop.xlane.xlu1 %564 }
 0x1a9   : > { %v593_v32 = vmul.f32 14.285714, %v565_v25  ;;  %v563_v33 = vpop.xlane.xlu0 %562 }
 0x1aa   : > { %v592_v55 = vmul.f32 14.285714, %v563_v33 }
 0x1ab   : > { %610 = vst.msk [vmem:[%s2123_s7 + $0x18] sm:$0xff] %vm606_vm0, %v593_v32 }
 0x1ac   : > { %609 = vst.msk [vmem:[%s2123_s7 + $0x10] sm:$0xff] %vm606_vm0, %v592_v55  ;;  %v569_v19 = vpop.xlane.xlu1 %568 }
 0x1ad   : > { %v595_v42 = vmul.f32 14.285714, %v569_v19  ;;  %v567_v22 = vpop.xlane.xlu0 %566 }
 0x1ae   : > { %v594_v8 = vmul.f32 14.285714, %v567_v22 }
 0x1af   : > { %612 = vst.msk [vmem:[%s2123_s7 + $0x28] sm:$0xff] %vm606_vm0, %v595_v42 }
 0x1b0   : > { %611 = vst.msk [vmem:[%s2123_s7 + $0x20] sm:$0xff] %vm606_vm0, %v594_v8  ;;  %v573_v23 = vpop.xlane.xlu1 %572 }
 0x1b1   : > { %v597_v36 = vmul.f32 14.285714, %v573_v23  ;;  %v571_v9 = vpop.xlane.xlu0 %570 }
 0x1b2   : > { %v596_v27 = vmul.f32 14.285714, %v571_v9 }
 0x1b3   : > { %614 = vst.msk [vmem:[%s2123_s7 + $0x38] sm:$0xff] %vm606_vm0, %v597_v36 }
 0x1b4   : > { %613 = vst.msk [vmem:[%s2123_s7 + $0x30] sm:$0xff] %vm606_vm0, %v596_v27  ;;  %v577_v31 = vpop.xlane.xlu1 %576 }
 0x1b5   : > { %v599_v37 = vmul.f32 14.285714, %v577_v31  ;;  %v575_v34 = vpop.xlane.xlu0 %574 }
 0x1b6   : > { %v598_v35 = vmul.f32 14.285714, %v575_v34 }
 0x1b7   : > { %616 = vst.msk [vmem:[%s2123_s7 + $0x48] sm:$0xff] %vm606_vm0, %v599_v37 }
 0x1b8   : > { %615 = vst.msk [vmem:[%s2123_s7 + $0x40] sm:$0xff] %vm606_vm0, %v598_v35  ;;  %v581_v54 = vpop.xlane.xlu1 %580 }
 0x1b9   : > { %v601_v38 = vmul.f32 14.285714, %v581_v54  ;;  %v579_v39 = vpop.xlane.xlu0 %578 }
 0x1ba   : > { %v600_v46 = vmul.f32 14.285714, %v579_v39 }
 0x1bb   : > { %618 = vst.msk [vmem:[%s2123_s7 + $0x58] sm:$0xff] %vm606_vm0, %v601_v38 }
 0x1bc   : > { %617 = vst.msk [vmem:[%s2123_s7 + $0x50] sm:$0xff] %vm606_vm0, %v600_v46  ;;  %v585_v43 = vpop.xlane.xlu1 %584 }
 0x1bd   : > { %v603_v47 = vmul.f32 14.285714, %v585_v43  ;;  %v583_v50 = vpop.xlane.xlu0 %582 }
 0x1be   : > { %v602_v40 = vmul.f32 14.285714, %v583_v50 }
 0x1bf   : > { %620 = vst.msk [vmem:[%s2123_s7 + $0x68] sm:$0xff] %vm606_vm0, %v603_v47 }
 0x1c0   : > { %619 = vst.msk [vmem:[%s2123_s7 + $0x60] sm:$0xff] %vm606_vm0, %v602_v40  ;;  %v589_v41 = vpop.xlane.xlu1 %588 }
 0x1c1   : > { %v605_v51 = vmul.f32 14.285714, %v589_v41  ;;  %v587_v58 = vpop.xlane.xlu0 %586 }
 0x1c2   : > { %v604_v5 = vmul.f32 14.285714, %v587_v58 }
 0x1c3   : > { %622 = vst.msk [vmem:[%s2123_s7 + $0x78] sm:$0xff] %vm606_vm0, %v605_v51 }
 0x1c4   : > { %621 = vst.msk [vmem:[%s2123_s7 + $0x70] sm:$0xff] %vm606_vm0, %v604_v5 }
 0x1c5 PF: > { %s866_s18 = sand.u32 1, %s1522_s15   ;;  %p2198_p3 = scmp.ne.s32.totalorder %s2191_s30, 0 }
 0x1c6   : > { %p2199_p1 = scmp.ge.s32.totalorder %s1542_s20, 2  ;;  %s867_s28 = scalar_lea.sflag [#allocation4], %s866_s18 }
 0x1c8   : > { %p1240_p6 = pnand %p2199_p1, %p2198_p3 }
 0x1ca   : > { %1513 = dma.done.wait (!%p1240_p6), %s867_s28, 1024  }
 0x1cb   : > { %1515 = vsyncadd (!%p1240_p6), %s867_s28, 4294966272  ;;  %s876_s14 = scalar_lea.sflag [#allocation9], %s866_s18 }
 0x1cc   : > { %1517 = dma.done.wait (!%p1240_p6), %s876_s14, 1024  }
 0x1cd   : > { %1519 = vsyncadd (!%p1240_p6), %s876_s14, 4294966272  ;;  %s27_s20 = sadd.s32 1, %s1542_s20   ;;  %s2200_s15 = smov %s1526_s16 }
 0x1ce   : > { %p24_p2 = scmp.ge.s32.totalorder %s27_s20, 4   ;;  %s2201_s16 = smov %s1530_s17 }
 0x1cf   : > { %s2202_s17 = smov %s1633_s29  ;;  %s2203_s18 = smov %s1538_s19 }
 0x1d0   : > { %s2204_s19 = smov %s2206_s23  ;;  %26 = sbr.rel (!%p24_p2) target bundleno = 10 (0xa), region = 115 }
 0x1d7   :  { %893 = vsyncpa [#allocation3], 1 }
 0x1d8   :  { %895 = vsyncpa [#allocation3 + $0x1], 1 }
 0x1d9   :  { %896 = vsyncpa [#allocation6], 1 }
 0x1da   :  { %898 = vsyncpa [#allocation6 + $0x1], 1 }
 0x1db   :  { %899 = vsyncpa [#allocation4], 1 }
 0x1dc   :  { %901 = vsyncpa [#allocation4 + $0x1], 1 }
 0x1dd   :  { %902 = vsyncpa [#allocation9], 1 }
 0x1de   :  { %904 = vsyncpa [#allocation9 + $0x1], 1 }

</bundles_post_ra>
